<compile_context>
chip_gen: v7x
topology: tpu7x:2x2x1
jax: 0.10.0
libtpu: 0.0.40
codegen_flags: <defaults>
</compile_context>

<pallas_src>
import functools

import jax
import jax.numpy as jnp
from jax.experimental import pallas as pl
from jax.experimental.pallas import tpu as pltpu

IGNORE_LABEL = -1
_LANES = 128
_ROW_ALIGN = 32   # row alignment that is tile-safe for int8 / bf16 / f32


def _cdiv(a, b):
    return -(-a // b)


def _num_tensorcores():
    """Best-effort TensorCores-per-chip (2 on v7x/megacore, 1 on v5e/v6e)."""
    try:
        info = pltpu.get_tpu_info()
    except Exception:
        info = None
    if info is not None:
        for name in ("num_cores", "core_count", "cores_per_chip",
                     "num_tensorcores", "tensorcore_count"):
            v = getattr(info, name, None)
            if isinstance(v, int) and v > 0:
                return min(v, 2)
    try:
        v = getattr(jax.devices()[0], "num_cores", None)
        if isinstance(v, int) and v > 0:
            return min(v, 2)
    except Exception:
        pass
    return 1


def _ppd_kernel(logits_ref, key_ref, out_ref, acc_ref, *, n_rows, block_rows):
    """Grid = (num_cores 'parallel', row-blocks-per-core 'arbitrary').

    logits_ref : (block_rows, 128) lane-dense logits, native dtype
    key_ref    : (block_rows, 128) int8; key[r, l] == l iff element (r, l) is
                 the gathered logit of a valid in-range pixel, else -1
    out_ref    : (1, 1, 2) f32 per-core partial [sum, count]
    acc_ref    : (2, 8, 128) f32 scratch accumulator
    """
    c = pl.program_id(0)
    i = pl.program_id(1)
    bpc = pl.num_programs(1)

    @pl.when(i == 0)
    def _():
        acc_ref[...] = jnp.zeros_like(acc_ref)

    x = logits_ref[...].astype(jnp.float32)        # (bn, 128)
    key = key_ref[...].astype(jnp.int32)           # (bn, 128)

    lane = jax.lax.broadcasted_iota(jnp.int32, key.shape, 1)
    # Global row ids from the UNCLAMPED (c, i): masks the padded tail and the
    # clamped phantom blocks of an unused core partition.
    row0 = (c * bpc + i) * block_rows
    row = jax.lax.broadcasted_iota(jnp.int32, key.shape, 0) + row0
    hit = (lane == key) & (row < n_rows)

    d = 1.0 - x
    contrib = jnp.where(hit, d * d, 0.0)
    ones = jnp.where(hit, 1.0, 0.0)

    # Vector accumulation only: fold the (bn, 128) block onto (8, 128) with
    # vreg adds; the cross-lane reduce happens once per core below.
    g = block_rows // 8
    acc_ref[0] += contrib.reshape(g, 8, _LANES).sum(axis=0)
    acc_ref[1] += ones.reshape(g, 8, _LANES).sum(axis=0)

    @pl.when(i == bpc - 1)
    def _():
        lane_o = jax.lax.broadcasted_iota(jnp.int32, out_ref.shape, 2)
        out_ref[...] = jnp.where(lane_o == 0,
                                 jnp.sum(acc_ref[0]), jnp.sum(acc_ref[1]))


def ppd_loss(contrast_logits, contrast_target, *, block_rows=None,
             vmem_budget_bytes=16 * 1024 * 1024, num_cores=None):
    """contrast_logits: [N, C] float; contrast_target: [N] int (-1 = ignore)."""
    N, C = contrast_logits.shape
    nc = N * C
    align = _ROW_ALIGN * _LANES
    ncp = _cdiv(nc, align) * align
    np_rows = ncp // _LANES                        # packed rows (multiple of 32)

    # --- lane-dense logits: (N, C) -> (np_rows, 128) ------------------------
    flat = contrast_logits.reshape(-1)
    if ncp != nc:                                  # rare; small pad copy
        flat = jnp.pad(flat, (0, ncp - nc))
    logits_packed = flat.reshape(np_rows, _LANES)

    # --- int8 "hit lane" key in the same packed layout ----------------------
    # key[f] = (pixel*C + target) % 128 if flat element f is the gathered
    # logit of a valid in-range pixel (and lives in the same 128-lane row),
    # else -1.  One fused XLA pass, N*C int8 bytes on the wire.
    f = jnp.arange(ncp, dtype=jnp.int32)
    pix = f // C
    tgt = contrast_target.astype(jnp.int32)[jnp.minimum(pix, N - 1)]
    h = pix * C + tgt                              # flat index of the hit element
    good = (tgt >= 0) & (tgt < C) & (f < nc) & ((h // _LANES) == (f // _LANES))
    key = jnp.where(good, h % _LANES, -1).astype(jnp.int8).reshape(np_rows, _LANES)

    # --- tiling --------------------------------------------------------------
    itemsize = int(jnp.dtype(contrast_logits.dtype).itemsize)
    if block_rows is None:
        # double-buffered (logits + int8 key) rows within the VMEM budget;
        # 16 MiB stays inside the 32 MiB scoped default on v5e/v6e/v7x.
        bytes_per_row = _LANES * itemsize + _LANES
        block_rows = vmem_budget_bytes // (2 * bytes_per_row)
    bn = max((min(int(block_rows), np_rows) // _ROW_ALIGN) * _ROW_ALIGN, _ROW_ALIGN)

    if num_cores is None:
        num_cores = _num_tensorcores()
    num_cores = max(1, min(int(num_cores), np_rows // _ROW_ALIGN))

    if num_cores > 1:
        # give each core at least two row blocks so its pipeline can overlap
        per_core = _cdiv(np_rows, num_cores)
        bn = min(bn, max((per_core // 2 // _ROW_ALIGN) * _ROW_ALIGN, _ROW_ALIGN))

    nb = _cdiv(np_rows, bn)                        # total row blocks
    bpc = _cdiv(nb, num_cores)                     # row blocks per core

    def row_block(c, i):
        # clamp phantom blocks into range; they are fully masked in-kernel
        return jnp.minimum(c * bpc + i, nb - 1)

    kernel = functools.partial(_ppd_kernel, n_rows=np_rows, block_rows=bn)

    partials = pl.pallas_call(
        kernel,
        out_shape=jax.ShapeDtypeStruct((num_cores, 1, 2), jnp.float32),
        grid_spec=pltpu.PrefetchScalarGridSpec(
            num_scalar_prefetch=0,
            grid=(num_cores, bpc),
            in_specs=[
                pl.BlockSpec((bn, _LANES), lambda c, i: (row_block(c, i), 0)),
                pl.BlockSpec((bn, _LANES), lambda c, i: (row_block(c, i), 0)),
            ],
            out_specs=pl.BlockSpec((1, 1, 2), lambda c, i: (c, 0, 0)),
            scratch_shapes=[pltpu.VMEM((2, 8, _LANES), jnp.float32)],
        ),
        compiler_params=pltpu.CompilerParams(
            dimension_semantics=("parallel", "arbitrary"),
            vmem_limit_bytes=32 * 1024 * 1024),
        cost_estimate=pl.CostEstimate(
            flops=int(4 * ncp), transcendentals=0,
            bytes_accessed=int(ncp * (itemsize + 1) + num_cores * 8)),
    )(logits_packed, key)

    total = jnp.sum(partials[:, 0, 0])
    count = jnp.sum(partials[:, 0, 1])
    return total / count


def ppd_loss_ref(contrast_logits, contrast_target):
    """Pure-JAX reference mirroring the PyTorch module (targets assumed in
    [-1, C); -1 = ignore)."""
    logits = contrast_logits.astype(jnp.float32)
    C = logits.shape[1]
    t = contrast_target.astype(jnp.int32)
    valid = (t != IGNORE_LABEL) & (t < C)
    idx = jnp.clip(t, 0, C - 1)
    gathered = jnp.take_along_axis(logits, idx[:, None], axis=1)[:, 0]
    sq = (1.0 - gathered) ** 2
    return jnp.sum(jnp.where(valid, sq, 0.0)) / jnp.sum(valid.astype(jnp.float32))


if __name__ == "__main__":
    key0 = jax.random.PRNGKey(0)
    k1, k2, k3, k4, k5, k6 = jax.random.split(key0, 6)

    # batch=2, 16x16 spatial -> N = 512 pixels, C = 16 prototype classes.
    N, C = 2 * 16 * 16, 16
    logits_f32 = jax.random.normal(k1, (N, C), dtype=jnp.float32)
    target = jax.random.randint(k2, (N,), -1, C, dtype=jnp.int32)
    ref = ppd_loss_ref(logits_f32, target)

    # 1) auto tiling / auto core count.
    loss = ppd_loss(logits_f32, target)
    jax.block_until_ready(loss)
    assert jnp.allclose(loss, ref, atol=1e-5, rtol=1e-5), (loss, ref)

    # 2) forced small blocks + forced 2-way core split on a shape with an odd
    #    number of row blocks: exercises the grid, the padded-tail mask and a
    #    clamped phantom block of the second core partition.
    N2 = 3 * 16 * 16
    logits2 = jax.random.normal(k3, (N2, C), dtype=jnp.float32)
    target2 = jax.random.randint(k4, (N2,), -1, C, dtype=jnp.int32)
    loss2 = ppd_loss(logits2, target2, block_rows=32, num_cores=2)
    jax.block_until_ready(loss2)
    ref2 = ppd_loss_ref(logits2, target2)
    assert jnp.allclose(loss2, ref2, atol=1e-5, rtol=1e-5), (loss2, ref2)

    # 3) bf16 on the wire (kernel accumulates in f32).
    logits_bf16 = logits_f32.astype(jnp.bfloat16)
    loss_bf16 = ppd_loss(logits_bf16, target)
    jax.block_until_ready(loss_bf16)
    ref_bf16 = ppd_loss_ref(logits_bf16, target)
    assert jnp.allclose(loss_bf16, ref_bf16, atol=1e-4, rtol=1e-4), (loss_bf16, ref_bf16)

    # 4) class count that does not divide 128 + flat length needing padding:
    #    pixels straddle 128-lane row boundaries, key handles it.
    N4, C4 = 100, 12
    logits4 = jax.random.normal(k5, (N4, C4), dtype=jnp.float32)
    target4 = jax.random.randint(k6, (N4,), -1, C4, dtype=jnp.int32)
    loss4 = ppd_loss(logits4, target4)
    jax.block_until_ready(loss4)
    ref4 = ppd_loss_ref(logits4, target4)
    assert jnp.allclose(loss4, ref4, atol=1e-5, rtol=1e-5), (loss4, ref4)

    print("KERNEL_OK")
</pallas_src>

<mosaic_0001>
module attributes {stable_mosaic.version = 11 : i64} {
  func.func @_ppd_kernel(%arg0: i32, %arg1: i32, %arg2: memref<64x128xf32, #tpu.memory_space<vmem>>, %arg3: memref<64x128xi8, #tpu.memory_space<vmem>>, %arg4: memref<1x1x2xf32, #tpu.memory_space<vmem>>, %arg5: memref<2x8x128xf32, #tpu.memory_space<vmem>>) attributes {dimension_semantics = [#tpu.dimension_semantics<parallel>, #tpu.dimension_semantics<arbitrary>], iteration_bounds = array<i64: 1, 1>, scalar_prefetch = 0 : i64, scratch_operands = 1 : i64, tpu.core_type = #tpu.core_type<tc>, window_params = [{transform_indices = @transform_0, window_bounds = array<i64: 64, 128>}, {transform_indices = @transform_1, window_bounds = array<i64: 64, 128>}, {transform_indices = @transform_2, window_bounds = array<i64: 1, 1, 2>}]} {
    %c0_i32 = arith.constant 0 : i32
    %0 = arith.cmpi eq, %arg1, %c0_i32 : i32
    %1 = arith.extui %0 : i1 to i32
    %c0_i32_0 = arith.constant 0 : i32
    %2 = arith.cmpi ne, %1, %c0_i32_0 : i32
    scf.if %2 {
      %cst_23 = arith.constant 0.000000e+00 : f32
      %44 = vector.broadcast %cst_23 : f32 to vector<2x8x128xf32>
      %c0_24 = arith.constant 0 : index
      %c0_25 = arith.constant 0 : index
      %c0_26 = arith.constant 0 : index
      %45 = vector.load %arg5[%c0_24, %c0_25, %c0_26] : memref<2x8x128xf32, #tpu.memory_space<vmem>>, vector<2x8x128xf32>
      tpu.vector_store %arg5[%c0_24, %c0_25, %c0_26], %44 {strides = array<i32>} : memref<2x8x128xf32, #tpu.memory_space<vmem>>, vector<2x8x128xf32>,
    } else {
    }
    %c0 = arith.constant 0 : index
    %c0_1 = arith.constant 0 : index
    %3 = vector.load %arg2[%c0, %c0_1] : memref<64x128xf32, #tpu.memory_space<vmem>>, vector<64x128xf32>
    %c0_2 = arith.constant 0 : index
    %c0_3 = arith.constant 0 : index
    %4 = vector.load %arg3[%c0_2, %c0_3] : memref<64x128xi8, #tpu.memory_space<vmem>>, vector<64x128xi8>
    %5 = arith.extsi %4 : vector<64x128xi8> to vector<64x128xi32>
    %6 = tpu.iota {dimensions = array<i32: 1>} : vector<64x128xi32>
    %c1_i32 = arith.constant 1 : i32
    %7 = arith.muli %arg0, %c1_i32 : i32
    %8 = arith.addi %7, %arg1 : i32
    %c64_i32 = arith.constant 64 : i32
    %9 = arith.muli %8, %c64_i32 : i32
    %10 = tpu.iota {dimensions = array<i32: 0>} : vector<64x128xi32>
    %11 = vector.broadcast %9 : i32 to vector<64x128xi32>
    %12 = arith.addi %10, %11 : vector<64x128xi32>
    %13 = arith.cmpi eq, %6, %5 : vector<64x128xi32>
    %c64_i32_4 = arith.constant 64 : i32
    %14 = vector.broadcast %c64_i32_4 : i32 to vector<64x128xi32>
    %15 = arith.cmpi slt, %12, %14 : vector<64x128xi32>
    %16 = arith.andi %13, %15 : vector<64x128xi1>
    %cst = arith.constant 1.000000e+00 : f32
    %17 = vector.broadcast %cst : f32 to vector<64x128xf32>
    %18 = arith.subf %17, %3 : vector<64x128xf32>
    %19 = arith.mulf %18, %18 : vector<64x128xf32>
    %cst_5 = arith.constant 0.000000e+00 : f32
    %20 = vector.broadcast %cst_5 : f32 to vector<64x128xf32>
    %21 = arith.select %16, %19, %20 : vector<64x128xi1>, vector<64x128xf32>
    %cst_6 = arith.constant 1.000000e+00 : f32
    %cst_7 = arith.constant 0.000000e+00 : f32
    %22 = vector.broadcast %cst_6 : f32 to vector<64x128xf32>
    %23 = vector.broadcast %cst_7 : f32 to vector<64x128xf32>
    %24 = arith.select %16, %22, %23 : vector<64x128xi1>, vector<64x128xf32>
    %c0_8 = arith.constant 0 : index
    %c0_9 = arith.constant 0 : index
    %c0_10 = arith.constant 0 : index
    %25 = vector.load %arg5[%c0_8, %c0_9, %c0_10] : memref<2x8x128xf32, #tpu.memory_space<vmem>>, vector<1x8x128xf32>
    %26 = vector.shape_cast %25 : vector<1x8x128xf32> to vector<8x128xf32>
    %27 = vector.shape_cast %21 : vector<64x128xf32> to vector<8x8x128xf32>
    %cst_11 = arith.constant dense<0.000000e+00> : vector<8x128xf32>
    %28 = vector.multi_reduction <add>, %27, %cst_11 [0] : vector<8x8x128xf32> to vector<8x128xf32>
    %29 = arith.addf %26, %28 : vector<8x128xf32>
    %c0_12 = arith.constant 0 : index
    %c0_13 = arith.constant 0 : index
    %c0_14 = arith.constant 0 : index
    %30 = vector.load %arg5[%c0_12, %c0_13, %c0_14] : memref<2x8x128xf32, #tpu.memory_space<vmem>>, vector<1x8x128xf32>
    %31 = vector.shape_cast %30 : vector<1x8x128xf32> to vector<8x128xf32>
    %32 = vector.shape_cast %29 : vector<8x128xf32> to vector<1x8x128xf32>
    tpu.vector_store %arg5[%c0_12, %c0_13, %c0_14], %32 {strides = array<i32>} : memref<2x8x128xf32, #tpu.memory_space<vmem>>, vector<1x8x128xf32>,
    %c1 = arith.constant 1 : index
    %c0_15 = arith.constant 0 : index
    %c0_16 = arith.constant 0 : index
    %33 = vector.load %arg5[%c1, %c0_15, %c0_16] : memref<2x8x128xf32, #tpu.memory_space<vmem>>, vector<1x8x128xf32>
    %34 = vector.shape_cast %33 : vector<1x8x128xf32> to vector<8x128xf32>
    %35 = vector.shape_cast %24 : vector<64x128xf32> to vector<8x8x128xf32>
    %cst_17 = arith.constant dense<0.000000e+00> : vector<8x128xf32>
    %36 = vector.multi_reduction <add>, %35, %cst_17 [0] : vector<8x8x128xf32> to vector<8x128xf32>
    %37 = arith.addf %34, %36 : vector<8x128xf32>
    %c1_18 = arith.constant 1 : index
    %c0_19 = arith.constant 0 : index
    %c0_20 = arith.constant 0 : index
    %38 = vector.load %arg5[%c1_18, %c0_19, %c0_20] : memref<2x8x128xf32, #tpu.memory_space<vmem>>, vector<1x8x128xf32>
    %39 = vector.shape_cast %38 : vector<1x8x128xf32> to vector<8x128xf32>
    %40 = vector.shape_cast %37 : vector<8x128xf32> to vector<1x8x128xf32>
    tpu.vector_store %arg5[%c1_18, %c0_19, %c0_20], %40 {strides = array<i32>} : memref<2x8x128xf32, #tpu.memory_space<vmem>>, vector<1x8x128xf32>,
    %c0_i32_21 = arith.constant 0 : i32
    %41 = arith.cmpi eq, %arg1, %c0_i32_21 : i32
    %42 = arith.extui %41 : i1 to i32
    %c0_i32_22 = arith.constant 0 : i32
    %43 = arith.cmpi ne, %42, %c0_i32_22 : i32
    scf.if %43 {
      %44 = tpu.iota {dimensions = array<i32: 2>} : vector<1x1x2xi32>
      %c0_i32_23 = arith.constant 0 : i32
      %45 = vector.broadcast %c0_i32_23 : i32 to vector<1x1x2xi32>
      %46 = arith.cmpi eq, %44, %45 : vector<1x1x2xi32>
      %c0_24 = arith.constant 0 : index
      %c0_25 = arith.constant 0 : index
      %c0_26 = arith.constant 0 : index
      %47 = vector.load %arg5[%c0_24, %c0_25, %c0_26] : memref<2x8x128xf32, #tpu.memory_space<vmem>>, vector<1x8x128xf32>
      %48 = vector.shape_cast %47 : vector<1x8x128xf32> to vector<8x128xf32>
      %49 = vector.shape_cast %48 : vector<8x128xf32> to vector<1x8x128xf32>
      %cst_27 = arith.constant dense<0.000000e+00> : vector<1xf32>
      %50 = vector.multi_reduction <add>, %49, %cst_27 [1, 2] : vector<1x8x128xf32> to vector<1xf32>
      %51 = vector.shape_cast %50 : vector<1xf32> to vector<1x1x1xf32>
      %52 = vector.extract %51[0, 0, 0] : f32 from vector<1x1x1xf32>
      %c1_28 = arith.constant 1 : index
      %c0_29 = arith.constant 0 : index
      %c0_30 = arith.constant 0 : index
      %53 = vector.load %arg5[%c1_28, %c0_29, %c0_30] : memref<2x8x128xf32, #tpu.memory_space<vmem>>, vector<1x8x128xf32>
      %54 = vector.shape_cast %53 : vector<1x8x128xf32> to vector<8x128xf32>
      %55 = vector.shape_cast %54 : vector<8x128xf32> to vector<1x8x128xf32>
      %cst_31 = arith.constant dense<0.000000e+00> : vector<1xf32>
      %56 = vector.multi_reduction <add>, %55, %cst_31 [1, 2] : vector<1x8x128xf32> to vector<1xf32>
      %57 = vector.shape_cast %56 : vector<1xf32> to vector<1x1x1xf32>
      %58 = vector.extract %57[0, 0, 0] : f32 from vector<1x1x1xf32>
      %59 = vector.broadcast %52 : f32 to vector<1x1x2xf32>
      %60 = vector.broadcast %58 : f32 to vector<1x1x2xf32>
      %61 = arith.select %46, %59, %60 : vector<1x1x2xi1>, vector<1x1x2xf32>
      %c0_32 = arith.constant 0 : index
      %c0_33 = arith.constant 0 : index
      %c0_34 = arith.constant 0 : index
      %62 = vector.load %arg4[%c0_32, %c0_33, %c0_34] : memref<1x1x2xf32, #tpu.memory_space<vmem>>, vector<1x1x2xf32>
      tpu.vector_store %arg4[%c0_32, %c0_33, %c0_34], %61 {strides = array<i32>} : memref<1x1x2xf32, #tpu.memory_space<vmem>>, vector<1x1x2xf32>,
    } else {
    }
    return
  }
  func.func @transform_0(%arg0: i32, %arg1: i32) -> (i32, i32) {
    %c1_i32 = arith.constant 1 : i32
    %0 = arith.muli %arg0, %c1_i32 : i32
    %1 = arith.addi %0, %arg1 : i32
    %c0_i32 = arith.constant 0 : i32
    %2 = arith.minsi %1, %c0_i32 : i32
    %c0_i32_0 = arith.constant 0 : i32
    %c0_i32_1 = arith.constant 0 : i32
    return %2, %c0_i32_0 : i32, i32
  }
  func.func @transform_1(%arg0: i32, %arg1: i32) -> (i32, i32) {
    %c1_i32 = arith.constant 1 : i32
    %0 = arith.muli %arg0, %c1_i32 : i32
    %1 = arith.addi %0, %arg1 : i32
    %c0_i32 = arith.constant 0 : i32
    %2 = arith.minsi %1, %c0_i32 : i32
    %c0_i32_0 = arith.constant 0 : i32
    %c0_i32_1 = arith.constant 0 : i32
    return %2, %c0_i32_0 : i32, i32
  }
  func.func @transform_2(%arg0: i32, %arg1: i32) -> (i32, i32, i32) {
    %c0_i32 = arith.constant 0 : i32
    %c0_i32_0 = arith.constant 0 : i32
    %c0_i32_1 = arith.constant 0 : i32
    return %arg0, %c0_i32, %c0_i32_0 : i32, i32, i32
  }
}

</mosaic_0001>

<bundles_post_ra>
// kernel: tpu_custom_call.1
= control target key start
LH: loop header
LB: loop body
LE: loop exit
PB: predicated region body
PF: predicated region fallthrough
CT: control target
= control target key end

     0   :  { %7 = vsyncpa [#allocation4], 0  ;;  %s438_s0 = inlined_call_operand.hbm [shape: f32[64,128], index: 0, kind: input, shape index: {}]   ;;  %s439_s1 = inlined_call_operand.hbm [shape: s8[64,128], index: 1, kind: input, shape index: {}]   ;;  %s440_s2 = inlined_call_operand.hbm [shape: f32[1,1,2], index: 2, kind: output, shape index: {}]  }
   0x1   :  { %8 = vsyncpa [#allocation7], 0 }
   0x2   :  { %9 = vsyncpa [#allocation5], 0  ;;  %s314_s9 = smov [#allocation3]   ;;  %s242_s13 = scalar_lea.hbm %s438_s0, 1024 }
   0x3   :  { %s21_s10 = sshll.u32 %s314_s9, 4  ;;  %p243_p0 = scmp.ne.s32.totalorder %s438_s0, %s242_s13  ;;  %s22_s10 = int_to_ptr.vmem [resolvable:$true] %s21_s10 }
   0x4   :  { %p246_p1 = scmp.lt.u32.totalorder %s242_s13, %s438_s0 }
   0x6   :  { %p248_p2 = pnand %p246_p1, %p243_p0 }
   0x8   :  { %251 = shalt.err (!%p248_p2)
}
   0x9   :  { %s252_s18 = scalar_lea.vmem %s22_s10, 1024  ;;  %p257_p4 = scmp.lt.s32.totalorder %s22_s10, %s22_s10 }
   0xa   :  { %p253_p3 = scmp.ne.s32.totalorder %s22_s10, %s252_s18  ;;  %p258_p5 = scmp.lt.s32.totalorder %s252_s18, %s252_s18 }
   0xc   :  { %p259_p6 = por %p258_p5, %p257_p4 }
   0xe   :  { %p260_p7 = pnand %p259_p6, %p253_p3 }
  0x10   :  { %263 = shalt.err (!%p260_p7)
}
  0x11   :  { %s315_s19 = smov 128   ;;  %s316_s20 = smov 8  }
  0x12   :  { %27 = dma.hbm_to_vmem [thread:$0]  %s438_s0, 1024, %s22_s10, [#allocation4], %s315_s19, %s315_s19, %s316_s20  }
  0x13   :  { %s317_s23 = smov [#allocation6]   ;;  %s264_s27 = scalar_lea.hbm %s439_s1, 256 }
  0x14   :  { %s39_s24 = sshll.u32 %s317_s23, 4  ;;  %p265_p8 = scmp.ne.s32.totalorder %s439_s1, %s264_s27  ;;  %s40_s24 = int_to_ptr.vmem [resolvable:$true] %s39_s24 }
  0x15   :  { %p268_p9 = scmp.lt.u32.totalorder %s264_s27, %s439_s1 }
  0x17   :  { %p270_p10 = pnand %p268_p9, %p265_p8 }
  0x19   :  { %273 = shalt.err (!%p270_p10)
}
  0x1a   :  { %s274_s4 = scalar_lea.vmem %s40_s24, 256  ;;  %p279_p12 = scmp.lt.s32.totalorder %s40_s24, %s40_s24 }
  0x1b   :  { %p275_p11 = scmp.ne.s32.totalorder %s40_s24, %s274_s4  ;;  %p280_p13 = scmp.lt.s32.totalorder %s274_s4, %s274_s4 }
  0x1d   :  { %p281_p0 = por %p280_p13, %p279_p12 }
  0x1f   :  { %p282_p1 = pnand %p281_p0, %p275_p11 }
  0x21   :  { %285 = shalt.err (!%p282_p1)
}
  0x22   :  { %45 = dma.hbm_to_vmem [thread:$0]  %s439_s1, 256, %s40_s24, [#allocation7], %s315_s19, %s315_s19, %s316_s20  }
  0x23   :  { %308 = dma.done.wait [#allocation4], 1024  }
  0x24   :  { %309 = vsyncadd [#allocation4], 4294966272 }
  0x25   :  { %310 = dma.done.wait [#allocation7], 256  }
  0x26   :  { %311 = vsyncadd [#allocation7], 4294967040  ;;  %v84_v0 = vlaneseq  ;;  %v66_v1 = vld [vmem:[#allocation3] sm:$0xff]  ;;  %v67_v2 = vld [vmem:[#allocation3 + $0x8] sm:$0xff]  ;;  %v318_v40 = vmov 0.0   ;;  %s319_s6 = smov [#allocation8]  }
  0x27   :  { %v68_v3 = vld [vmem:[#allocation3 + $0x10] sm:$0xff]  ;;  %v69_v4 = vld [vmem:[#allocation3 + $0x18] sm:$0xff]  ;;  %v74_v5 = vld [vmem:[#allocation6] sm:$0xff]  ;;  %v130_v7 = vsub.f32 1.0, %v66_v1  ;;  %v131_v12 = vsub.f32 1.0, %v67_v2  ;;  %s218_s7 = sshll.u32 %s319_s6, 4  ;;  %s219_s7 = int_to_ptr.vmem [resolvable:$true] %s218_s7 }
  0x28   :  { %v359_v6 = vand.u32 127, %v84_v0  ;;  %v70_v8 = vld [vmem:[#allocation3 + $0x20] sm:$0xff]  ;;  %v76_v9 = vunpack.c.0.s8 %v74_v5  ;;  %v77_v10 = vunpack.c.1.s8 %v74_v5  ;;  %v78_v11 = vunpack.c.2.s8 %v74_v5  ;;  %v75_v13 = vld [vmem:[#allocation6 + $0x8] sm:$0xff]  ;;  %v72_v21 = vld [vmem:[#allocation3 + $0x30] sm:$0xff]  ;;  %s286_s9 = scalar_lea.vmem %s219_s7, 16  ;;  %s290_s10 = scalar_lea.vmem %s219_s7, 32 }
  0x29   :  { %v132_v14 = vsub.f32 1.0, %v68_v3  ;;  %v133_v15 = vsub.f32 1.0, %v69_v4  ;;  %v71_v16 = vld [vmem:[#allocation3 + $0x28] sm:$0xff]  ;;  %v79_v17 = vunpack.c.3.s8 %v74_v5  ;;  %v134_v20 = vsub.f32 1.0, %v70_v8  ;;  %v73_v29 = vld [vmem:[#allocation3 + $0x38] sm:$0xff]  ;;  %p287_p2 = scmp.ne.s32.totalorder %s219_s7, %s286_s9  ;;  %p291_p3 = scmp.lt.s32.totalorder %s219_s7, %s219_s7 }
  0x2a   :  { %vm362_vm0 = vcmp.eq.s32.totalorder %v359_v6, %v76_v9  ;;  %vm367_vm1 = vcmp.eq.s32.totalorder %v359_v6, %v77_v10  ;;  %v80_v22 = vunpack.c.0.s8 %v75_v13  ;;  %vm372_vm2 = vcmp.eq.s32.totalorder %v359_v6, %v78_v11  ;;  %p292_p4 = scmp.lt.s32.totalorder %s290_s10, %s286_s9 }
  0x2b   :  { %v138_v24 = vmul.f32 %v130_v7, %v130_v7  ;;  %v139_v25 = vmul.f32 %v131_v12, %v131_v12  ;;  %v135_v26 = vsub.f32 1.0, %v71_v16  ;;  %v140_v27 = vmul.f32 %v132_v14, %v132_v14 }
  0x2c   :  { %v141_v28 = vmul.f32 %v133_v15, %v133_v15  ;;  %v81_v30 = vunpack.c.1.s8 %v75_v13  ;;  %vm377_vm3 = vcmp.eq.s32.totalorder %v359_v6, %v79_v17  ;;  %v136_v34 = vsub.f32 1.0, %v72_v21  ;;  %p293_p5 = por %p292_p4, %p291_p3 }
  0x2d   :  { %v146_v32 = vsel %vm362_vm0, %v138_v24, 0.0  ;;  %v147_v33 = vsel %vm367_vm1, %v139_v25, 0.0  ;;  %v142_v35 = vmul.f32 %v134_v20, %v134_v20  ;;  %v148_v36 = vsel %vm372_vm2, %v140_v27, 0.0 }
  0x2e   :  { %v82_v37 = vunpack.c.2.s8 %v75_v13  ;;  %vm388_vm4 = vcmp.eq.s32.totalorder %v359_v6, %v80_v22  ;;  %v163_v39 = vadd.f32 %v147_v33, %v146_v32  ;;  %v154_v41 = vsel %vm362_vm0, 1.0, %v318_v40  ;;  %p294_p6 = pnand %p293_p5, %p287_p2 }
  0x2f   :  { %v137_v42 = vsub.f32 1.0, %v73_v29  ;;  %v143_v43 = vmul.f32 %v135_v26, %v135_v26  ;;  %v149_v44 = vsel %vm377_vm3, %v141_v28, 0.0  ;;  %v155_v45 = vsel %vm367_vm1, 1.0, %v318_v40 }
  0x30   :  { %v83_v46 = vunpack.c.3.s8 %v75_v13  ;;  %vm399_vm5 = vcmp.eq.s32.totalorder %v359_v6, %v81_v30  ;;  %v164_v48 = vadd.f32 %v163_v39, %v148_v36  ;;  %v156_v49 = vsel %vm372_vm2, 1.0, %v318_v40 }
  0x31   :  { %v144_v50 = vmul.f32 %v136_v34, %v136_v34  ;;  %v150_v51 = vsel %vm388_vm4, %v142_v35, 0.0  ;;  %v174_v52 = vadd.f32 %v155_v45, %v154_v41  ;;  %vm408_vm6 = vcmp.eq.s32.totalorder %v359_v6, %v82_v37 }
  0x32   :  { %v165_v54 = vadd.f32 %v164_v48, %v149_v44  ;;  %v157_v55 = vsel %vm377_vm3, 1.0, %v318_v40  ;;  %v145_v56 = vmul.f32 %v137_v42, %v137_v42  ;;  %v151_v57 = vsel %vm399_vm5, %v143_v43, 0.0 }
  0x33   :  { %v175_v58 = vadd.f32 %v174_v52, %v156_v49  ;;  %vm113_vm7 = vcmp.eq.s32.totalorder %v359_v6, %v83_v46  ;;  %v158_v60 = vsel %vm388_vm4, 1.0, %v318_v40  ;;  %v152_v61 = vsel %vm408_vm6, %v144_v50, 0.0 }
  0x34   :  { %v166_v59 = vadd.f32 %v165_v54, %v150_v51  ;;  %v159_v0 = vsel %vm399_vm5, 1.0, %v318_v40  ;;  %v153_v1 = vsel %vm113_vm7, %v145_v56, 0.0  ;;  %v160_v4 = vsel %vm408_vm6, 1.0, %v318_v40 }
  0x35   :  { %v176_v62 = vadd.f32 %v175_v58, %v157_v55  ;;  %v161_v8 = vsel %vm113_vm7, 1.0, %v318_v40  ;;  %vm186_vm8 = vcmp.eq.s32.totalorder %v359_v6, 0  ;;  %vm210_vm9 = vcmask 8192  }
  0x36   :  { %v167_v63 = vadd.f32 %v166_v59, %v151_v57 }
  0x37   :  { %v177_v2 = vadd.f32 %v176_v62, %v158_v60 }
  0x38   :  { %v168_v3 = vadd.f32 %v167_v63, %v152_v61 }
  0x39   :  { %v178_v5 = vadd.f32 %v177_v2, %v159_v0 }
  0x3a   :  { %v169_v7 = vadd.f32 %v168_v3, %v153_v1 }
  0x3b   :  { %v179_v9 = vadd.f32 %v178_v5, %v160_v4 }
  0x3c   :  { %188 = vadd.xlane.f32.xlu0 %v169_v7 }
  0x3d   :  { %v180_v10 = vadd.f32 %v179_v9, %v161_v8 }
  0x40   :  { %198 = vadd.xlane.f32.xlu0 %v180_v10 }
  0xc9   :  { %v189_v11 = vpop.xlane.xlu0 %188 }
  0xca   :  { %v190_v12 = vrot.slane %v189_v11, 4 }
  0xcc   :  { %v191_v13 = vadd.f32 %v190_v12, %v189_v11 }
  0xcd   :  { %v199_v14 = vpop.xlane.xlu0 %198 }
  0xce   :  { %v192_v15 = vrot.slane %v191_v13, 2  ;;  %v200_v16 = vrot.slane %v199_v14, 4 }
  0xd0   :  { %v201_v17 = vadd.f32 %v200_v16, %v199_v14  ;;  %v193_v18 = vadd.f32 %v192_v15, %v191_v13 }
  0xd2   :  { %v202_v19 = vrot.slane %v201_v17, 2  ;;  %v194_v20 = vrot.slane %v193_v18, 1 }
  0xd4   :  { %v203_v21 = vadd.f32 %v202_v19, %v201_v17  ;;  %v195_v22 = vadd.f32 %v194_v20, %v193_v18 }
  0xd6   :  { %232 = vpush %v195_v22  ;;  %v204_v23 = vrot.slane %v203_v21, 1 }
  0xd8   :  { %v205_v24 = vadd.f32 %v204_v23, %v203_v21 }
  0xda   :  { %234 = vpush %v205_v24 }
 0x107   :  { %s233_s1 = spop %232 }
 0x108   :  { %v207_v25 = vstv %s233_s1 }
 0x10b   :  { %s235_s8 = spop %234 }
 0x10c   :  { %v208_v26 = vstv %s235_s8 }
 0x10d   :  { %v209_v27 = vsel %vm186_vm8, %v207_v25, %v208_v26 }
 0x10e   :  { %211 = vst.msk [vmem:[#allocation8] sm:$0x1] %vm210_vm9, %v209_v27 }
 0x10f   :  { %297 = shalt.err (!%p294_p6)
}
 0x110   :  { %s298_s13 = scalar_lea.hbm %s440_s2, 16 }
 0x111   :  { %p299_p7 = scmp.ne.s32.totalorder %s440_s2, %s298_s13  ;;  %p302_p8 = scmp.lt.u32.totalorder %s298_s13, %s440_s2 }
 0x113   :  { %p304_p9 = pnand %p302_p8, %p299_p7 }
 0x115   :  { %307 = shalt.err (!%p304_p9)
}
 0x116   :  { %221 = dma.vmem_to_hbm [thread:$0]  %s219_s7, 16, %s440_s2, [#allocation5]  }
 0x117   :  { %312 = dma.done.wait [#allocation5], 16  }
 0x118   :  { %313 = vsyncadd [#allocation5], 4294967280 }
 0x119   :  { %225 = vsyncpa [#allocation4], 1 }
 0x11a   :  { %226 = vsyncpa [#allocation7], 1 }
 0x11b   :  { %227 = vsyncpa [#allocation5], 1 }

</bundles_post_ra>
